<compile_context>
chip_gen: v5e
topology: v5e:2x2
jax: 0.10.0
libtpu: 0.0.40
codegen_flags: <defaults>
</compile_context>

<pallas_src>
import math
from functools import partial

import jax
import jax.numpy as jnp
from jax.experimental import pallas as pl
from jax.experimental.pallas import tpu as pltpu

N_OUT = 24      # module-level constant `N` in the reference code


def _round_up(x, m):
    return ((x + m - 1) // m) * m


# ----------------------------------------------------------------------------
# Kernel: one fused affine map per batch tile:  out = z_tile @ W + b
#   z arrives as f32; the compute-dtype cast (if any) happens here on the VPU,
#   hidden under the DMA — no wrapper-side cast pass over HBM.
# ----------------------------------------------------------------------------
def _affine_kernel(z_ref, w_ref, b_ref, out_ref):
    z = z_ref[...].astype(w_ref.dtype)                 # in-kernel cast (no-op for f32)
    acc = jnp.dot(z, w_ref[...], preferred_element_type=jnp.float32)
    out_ref[...] = (acc + b_ref[...]).astype(out_ref.dtype)   # bias add in f32


# ----------------------------------------------------------------------------
# Parameter collapse (exact — no activation between layers). Call once and
# reuse the result via `decoder_apply` when params are static across calls.
# ----------------------------------------------------------------------------
def collapse_decoder_params(params, compute_dtype=jnp.float32):
    w = params["w1"] @ params["w2"] @ params["w3"] @ params["w4"]          # (z_dim, N_OUT)
    b = ((params["b1"] @ params["w2"] + params["b2"]) @ params["w3"]
         + params["b3"]) @ params["w4"] + params["b4"]                     # (1, N_OUT)
    return w.astype(compute_dtype), b.astype(jnp.float32)                  # bias stays f32


# ----------------------------------------------------------------------------
# Pallas call on pre-collapsed parameters
# ----------------------------------------------------------------------------
@partial(jax.jit, static_argnames=("tile_b",))
def decoder_apply(z, w, b, *, tile_b=4096):
    """out = z @ w + b, tiled over the batch dimension.

    z: (B, z_dim) float32 (kept f32 in HBM; cast happens in-kernel)
    w: (z_dim, N_OUT) in the desired MXU compute dtype (f32 or bf16)
    b: (1, N_OUT) float32
    """
    B, z_dim = z.shape
    n_out = w.shape[1]

    # Batch tile: big (amortize ~0.35us/step overhead), multiple of 8 (sublane
    # rule), and capped so the "parallel" grid keeps >= 2 steps when the batch
    # is large enough — lets both v7x TensorCores participate.
    tb = int(tile_b)
    if B > 16:
        tb = min(tb, _round_up(pl.cdiv(B, 2), 8))
    if tb >= B:
        tb = B                      # single block == full array extent (any B)
    else:
        tb = _round_up(tb, 8)       # partial edge block is masked by Pallas

    grid = (pl.cdiv(B, tb),)

    bytes_accessed = (B * z_dim * 4                       # read z (f32)
                      + B * n_out * 4                     # write out (f32)
                      + w.size * w.dtype.itemsize         # read W once
                      + b.size * 4)                       # read b once
    cost = pl.CostEstimate(flops=2 * B * z_dim * n_out,
                           transcendentals=0,
                           bytes_accessed=bytes_accessed)

    return pl.pallas_call(
        _affine_kernel,
        out_shape=jax.ShapeDtypeStruct((B, n_out), jnp.float32),
        grid=grid,
        in_specs=[
            pl.BlockSpec((tb, z_dim), lambda i: (i, 0)),    # z tile, streamed over batch
            pl.BlockSpec((z_dim, n_out), lambda i: (0, 0)), # collapsed W, resident
            pl.BlockSpec((1, n_out), lambda i: (0, 0)),     # collapsed bias, resident
        ],
        out_specs=pl.BlockSpec((tb, n_out), lambda i: (i, 0)),  # natural 24-wide output
        compiler_params=pltpu.CompilerParams(
            dimension_semantics=("parallel",),              # megacore sharding on v7x
        ),
        cost_estimate=cost,
    )(z, w, b)


# ----------------------------------------------------------------------------
# Convenience wrapper: collapse + apply in one call
# ----------------------------------------------------------------------------
@partial(jax.jit, static_argnames=("compute_dtype", "tile_b"))
def decoder_forward(z, params, *, compute_dtype=jnp.float32, tile_b=4096):
    """Fused Decoder forward.

    z:       (B, z_dim) float32
    params:  dict with w1..w4 (in, out) and b1..b4 (1, out) float32 arrays.
    compute_dtype: dtype for the MXU operands (f32 default = exact; bf16 optional).
    """
    w, b = collapse_decoder_params(params, compute_dtype)
    return decoder_apply(z, w, b, tile_b=tile_b)


# ----------------------------------------------------------------------------
# Init + pure-JAX reference of the PyTorch forward (no tanh — matches module)
# ----------------------------------------------------------------------------
def init_decoder_params(key, z_dim, hidden_dim):
    """PyTorch nn.Linear default init: U(-1/sqrt(fan_in), 1/sqrt(fan_in))."""
    def linear(k, fan_in, fan_out):
        kw, kb = jax.random.split(k)
        bound = 1.0 / math.sqrt(fan_in)
        w = jax.random.uniform(kw, (fan_in, fan_out), jnp.float32, -bound, bound)
        b = jax.random.uniform(kb, (1, fan_out), jnp.float32, -bound, bound)
        return w, b

    k1, k2, k3, k4 = jax.random.split(key, 4)
    w1, b1 = linear(k1, z_dim, hidden_dim)
    w2, b2 = linear(k2, hidden_dim, hidden_dim)
    w3, b3 = linear(k3, hidden_dim, hidden_dim)
    w4, b4 = linear(k4, hidden_dim, N_OUT)
    return {"w1": w1, "b1": b1, "w2": w2, "b2": b2,
            "w3": w3, "b3": b3, "w4": w4, "b4": b4}


def decoder_reference(z, p):
    h = z @ p["w1"] + p["b1"]
    h = h @ p["w2"] + p["b2"]
    h = h @ p["w3"] + p["b3"]
    h = h @ p["w4"] + p["b4"]
    return h


if __name__ == "__main__":
    key = jax.random.PRNGKey(0)
    k_params, k_z, k_z2 = jax.random.split(key, 3)

    batch, z_dim, hidden_dim = 8, 16, 32
    params = init_decoder_params(k_params, z_dim, hidden_dim)
    z = jax.random.normal(k_z, (batch, z_dim), jnp.float32)

    ref = decoder_reference(z, params)

    # Default f32 path: exact (up to f32 roundoff) vs the 4-layer reference.
    out_f32 = jax.block_until_ready(decoder_forward(z, params))
    assert out_f32.shape == (batch, N_OUT)
    assert jnp.allclose(out_f32, ref, atol=1e-4, rtol=1e-4)

    # Optional bf16-MXU path (f32 accumulate + f32 bias): looser tolerance.
    out_bf16 = jax.block_until_ready(
        decoder_forward(z, params, compute_dtype=jnp.bfloat16))
    assert out_bf16.shape == (batch, N_OUT)
    assert jnp.allclose(out_bf16, ref, atol=3e-2, rtol=3e-2)

    # Ragged batch (B % tile != 0) exercises the masked edge block and the
    # >=2-grid-step path, plus the pre-collapsed `decoder_apply` entry point.
    batch2 = 20
    z2 = jax.random.normal(k_z2, (batch2, z_dim), jnp.float32)
    w_c, b_c = collapse_decoder_params(params, jnp.float32)   # collapse once, reuse
    out_ragged = jax.block_until_ready(decoder_apply(z2, w_c, b_c, tile_b=16))
    ref2 = decoder_reference(z2, params)
    assert out_ragged.shape == (batch2, N_OUT)
    assert jnp.allclose(out_ragged, ref2, atol=1e-4, rtol=1e-4)

    print("KERNEL_OK")
</pallas_src>

<mosaic_0001>
module attributes {stable_mosaic.version = 11 : i64} {
  func.func @_affine_kernel(%arg0: i32, %arg1: memref<8x16xf32, #tpu.memory_space<vmem>>, %arg2: memref<16x24xf32, #tpu.memory_space<vmem>>, %arg3: memref<1x24xf32, #tpu.memory_space<vmem>>, %arg4: memref<8x24xf32, #tpu.memory_space<vmem>>) attributes {dimension_semantics = [#tpu.dimension_semantics<parallel>], iteration_bounds = array<i64: 1>, scalar_prefetch = 0 : i64, scratch_operands = 0 : i64, tpu.core_type = #tpu.core_type<tc>, window_params = [{transform_indices = @transform_0, window_bounds = array<i64: 8, 16>}, {pipeline_mode = #tpu.pipeline_mode<synchronous>, transform_indices = @transform_1, window_bounds = array<i64: 16, 24>}, {pipeline_mode = #tpu.pipeline_mode<synchronous>, transform_indices = @transform_2, window_bounds = array<i64: 1, 24>}, {transform_indices = @transform_3, window_bounds = array<i64: 8, 24>}]} {
    %c0 = arith.constant 0 : index
    %c0_0 = arith.constant 0 : index
    %0 = vector.load %arg1[%c0, %c0_0] : memref<8x16xf32, #tpu.memory_space<vmem>>, vector<8x16xf32>
    %c0_1 = arith.constant 0 : index
    %c0_2 = arith.constant 0 : index
    %1 = vector.load %arg2[%c0_1, %c0_2] : memref<16x24xf32, #tpu.memory_space<vmem>>, vector<16x24xf32>
    %cst = arith.constant dense<0.000000e+00> : vector<8x24xf32>
    %2 = tpu.matmul %0, %1, %cst {dimension_numbers = #tpu.dot_dimension_numbers<[1], [0], [0], [1], [0, 0, 1, 1], [], []>} : vector<8x16xf32>, vector<16x24xf32>, vector<8x24xf32> -> vector<8x24xf32>
    %c0_3 = arith.constant 0 : index
    %c0_4 = arith.constant 0 : index
    %3 = vector.load %arg3[%c0_3, %c0_4] : memref<1x24xf32, #tpu.memory_space<vmem>>, vector<1x24xf32>
    %4 = vector.broadcast %3 : vector<1x24xf32> to vector<8x24xf32>
    %5 = arith.addf %2, %4 : vector<8x24xf32>
    %c0_5 = arith.constant 0 : index
    %c0_6 = arith.constant 0 : index
    %6 = vector.load %arg4[%c0_5, %c0_6] : memref<8x24xf32, #tpu.memory_space<vmem>>, vector<8x24xf32>
    tpu.vector_store %arg4[%c0_5, %c0_6], %5 {strides = array<i32>} : memref<8x24xf32, #tpu.memory_space<vmem>>, vector<8x24xf32>,
    return
  }
  func.func @transform_0(%arg0: i32) -> (i32, i32) {
    %c0_i32 = arith.constant 0 : i32
    %c0_i32_0 = arith.constant 0 : i32
    return %arg0, %c0_i32 : i32, i32
  }
  func.func @transform_1(%arg0: i32) -> (i32, i32) {
    %c0_i32 = arith.constant 0 : i32
    %c0_i32_0 = arith.constant 0 : i32
    %c0_i32_1 = arith.constant 0 : i32
    return %c0_i32, %c0_i32_0 : i32, i32
  }
  func.func @transform_2(%arg0: i32) -> (i32, i32) {
    %c0_i32 = arith.constant 0 : i32
    %c0_i32_0 = arith.constant 0 : i32
    %c0_i32_1 = arith.constant 0 : i32
    return %c0_i32, %c0_i32_0 : i32, i32
  }
  func.func @transform_3(%arg0: i32) -> (i32, i32) {
    %c0_i32 = arith.constant 0 : i32
    %c0_i32_0 = arith.constant 0 : i32
    return %arg0, %c0_i32 : i32, i32
  }
}

</mosaic_0001>

<bundles_post_ra>
// kernel: decoder_apply.1
= control target key start
LH: loop header
LB: loop body
LE: loop exit
PB: predicated region body
PF: predicated region fallthrough
CT: control target
= control target key end

     0   :  { %8 = vsyncpa [#allocation3], 0  ;;  %s218_s0 = inlined_call_operand.hbm [shape: f32[8,16], index: 0, kind: input, shape index: {}]   ;;  %s219_s1 = inlined_call_operand.hbm [shape: f32[16,24], index: 1, kind: input, shape index: {}]   ;;  %s220_s2 = inlined_call_operand.vmem [shape: f32[1,24], index: 2, kind: input, shape index: {}]   ;;  %s221_s3 = inlined_call_operand.hbm [shape: f32[8,24], index: 3, kind: output, shape index: {}]  }
   0x1   :  { %9 = vsyncpa [#allocation6], 0 }
   0x2   :  { %10 = vsyncpa [#allocation4], 0  ;;  %s16_s14 = sshll.u32 %s218_s0, 4  ;;  %s181_s15 = smov [#allocation2]   ;;  %s17_s14 = int_to_ptr.hbm [resolvable:$true] %s16_s14 }
   0x3   :  { %s18_s16 = sshll.u32 %s181_s15, 4  ;;  %s26_s19 = sshll.u32 %s219_s1, 4  ;;  %s19_s16 = int_to_ptr.vmem [resolvable:$true] %s18_s16  ;;  %s27_s19 = int_to_ptr.hbm [resolvable:$true] %s26_s19 }
   0x4   :  { %21 = dma.hbm_to_vmem [thread:$0]  %s17_s14, 128, %s19_s16, [#allocation3]  }
   0x5   :  { %s182_s20 = smov [#allocation5]   ;;  %s183_s22 = smov 128  }
   0x6   :  { %s28_s21 = sshll.u32 %s182_s20, 4  ;;  %s184_s23 = smov 8   ;;  %s29_s21 = int_to_ptr.vmem [resolvable:$true] %s28_s21 }
   0x7   :  { %34 = dma.hbm_to_vmem [thread:$0]  %s27_s19, 256, %s29_s21, [#allocation6], %s183_s22, %s183_s22, %s184_s23  }
   0x8   :  { %175 = dma.done.wait [#allocation3], 128  }
   0x9   :  { %176 = vsyncadd [#allocation3], 4294967168 }
   0xa   :  { %177 = dma.done.wait [#allocation6], 256  }
   0xb   :  { %178 = vsyncadd [#allocation6], 4294967040  ;;  %v47_v0 = vld [vmem:[#allocation5 + $0x8] sm:$0xff]  ;;  %v46_v1 = vld [vmem:[#allocation5] sm:$0xff]  ;;  %vm52_vm0 = vcmask 130048   ;;  %s185_s24 = smov [#allocation7]  }
   0xc   :  { %70 = vmatpush.msra.mxu0 %v47_v0  ;;  %v45_v2 = vld [vmem:[#allocation2] sm:$0xff]  ;;  %s83_s25 = sshll.u32 %s185_s24, 4  ;;  %s85_s28 = sshll.u32 %s221_s3, 4  ;;  %vm76_vm1 = vcmask 195584   ;;  %s84_s25 = int_to_ptr.vmem [resolvable:$true] %s83_s25  ;;  %s86_s28 = int_to_ptr.hbm [resolvable:$true] %s85_s28 }
   0xd   :  { %v102_v3 = vld [vmem:[%s220_s2] ss:$0 sm:$0xff] }
   0xe   :  { %71 = vmatpush.msra.mxu0 %v46_v1 }
   0xf   :  { %96 = vmatmul.msk.f32.vlgmr.msra.gmra.mxu0 %vm52_vm0, %v45_v2 }
  0x8c   :  { %v73_v4 = vpop.f32.mrf.mxu0 }
  0x8d   :  { %v74_v5 = vadd.f32 %v102_v3, %v73_v4 }
  0x8f   :  { %77 = vst.msk [vmem:[#allocation7] sm:$0xff] %vm76_vm1, %v74_v5 }
  0x90   :  { %88 = dma.vmem_to_hbm [thread:$0]  %s84_s25, 128, %s86_s28, [#allocation4]  }
  0x91   :  { %179 = dma.done.wait [#allocation4], 128  }
  0x92   :  { %180 = vsyncadd [#allocation4], 4294967168 }
  0x93   :  { %93 = vsyncpa [#allocation3], 1 }
  0x94   :  { %94 = vsyncpa [#allocation6], 1 }
  0x95   :  { %95 = vsyncpa [#allocation4], 1 }

</bundles_post_ra>
